<compile_context>
chip_gen: v6e
topology: v6e:2x2x1
jax: 0.10.0
libtpu: 0.0.40
codegen_flags: <defaults>
</compile_context>

<pallas_src>
import functools

import jax
import jax.numpy as jnp
from jax import lax
from jax.experimental import pallas as pl
from jax.experimental.pallas import tpu as pltpu


def _round_up(v, m):
    return -(-v // m) * m


# --------------------------------------------------------------------------
# Fused kernel: conv1(+bias,ReLU) -> conv2(+bias,ReLU) on one (batch, time) tile.
#
#   x_ref : (1, Cin_p, Tt)      current time tile (channel-padded)
#   w1_ref: (C1_p, K*Cin_p)     conv1 weights, tap-major flattened (im2col)
#   b1_ref: (C1_p, 1)  f32
#   w2_ref: (Cout2, K*C1_p)     conv2 weights, tap-major flattened
#   b2_ref: (Cout2, 1) f32
#   o_ref : (1, Cout2, Tt)
#   xe_ref: (Cin_p, x_off+Tt)   persistent scratch: cols [x_off-halo, x_off)
#                               carry the previous tile's tail (causal halo),
#                               cols [x_off, x_off+Tt) hold the current tile.
#   h_ref : (C1_p, Tt+pad)      conv1 activation staging (pad-wide halo that
#                               conv2 needs is recomputed per tile).
# --------------------------------------------------------------------------
def _fused_tcn_block_kernel(x_ref, w1_ref, b1_ref, w2_ref, b2_ref, o_ref,
                            xe_ref, h_ref, *, dilation, K, pad):
    f32 = jnp.float32
    Tt = x_ref.shape[2]
    T1 = Tt + pad
    halo = 2 * pad
    x_off = xe_ref.shape[1] - Tt          # 128-aligned by construction
    t_idx = pl.program_id(1)
    d = dilation

    x_cur = x_ref[0]                      # (Cin_p, Tt)

    if pad > 0:
        @pl.when(t_idx == 0)
        def _():
            # First tile of a batch: causal left padding of x is zero.
            xe_ref[:, x_off - halo:x_off] = jnp.zeros(
                (xe_ref.shape[0], halo), xe_ref.dtype)

        xe_ref[:, x_off:] = x_cur         # lane-aligned full-tile store

        # One im2col matmul instead of K tap-dots: stack the K dilated shifts.
        stack1 = jnp.concatenate(
            [xe_ref[:, x_off - halo + k * d: x_off - halo + k * d + T1]
             for k in range(K)], axis=0)  # (K*Cin_p, T1)

        # Carry this tile's tail as the next tile's halo (next iteration reads
        # it before it is overwritten again).
        xe_ref[:, x_off - halo:x_off] = x_cur[:, Tt - halo:]
    else:
        stack1 = x_cur                    # K == 1: T1 == Tt, no halo needed

    h = jnp.dot(w1_ref[...], stack1, preferred_element_type=f32)
    h = jnp.maximum(h + b1_ref[...], 0.0)                 # (C1_p, T1) f32

    if pad > 0:
        h_ref[...] = h.astype(h_ref.dtype)

        @pl.when(t_idx == 0)
        def _():
            # conv2's causal padding must be zero (not relu(b1)): zero the
            # columns of h at negative absolute time -- first tile only.
            h_ref[:, :pad] = jnp.zeros((h_ref.shape[0], pad), h_ref.dtype)

        stack2 = jnp.concatenate(
            [h_ref[:, k * d: k * d + Tt] for k in range(K)], axis=0)
    else:
        stack2 = h.astype(w2_ref.dtype)

    out = jnp.dot(w2_ref[...], stack2, preferred_element_type=f32)
    out = jnp.maximum(out + b2_ref[...], 0.0)
    o_ref[0] = out.astype(o_ref.dtype)


# --------------------------------------------------------------------------
# Wrapper: (B, Cin, L) -> (B, Cout, L), matching the PyTorch module (eval).
# --------------------------------------------------------------------------
def temporal_block_forward(x_ncl, params, dilation, *, time_tile=1024,
                           compute_dtype=jnp.bfloat16, out_dtype=None):
    (w1_oik, b1), (w2_oik, b2) = params       # conv weights in (Cout, Cin, K)
    B, Cin, L = x_ncl.shape
    Cout1, _, K = w1_oik.shape
    Cout2 = w2_oik.shape[0]
    if out_dtype is None:
        out_dtype = x_ncl.dtype

    pad = (K - 1) * dilation                  # per-conv causal pad
    halo = 2 * pad                            # x halo the fused block needs

    # Channel padding to the native sublane tile -> tile-aligned im2col stacks.
    sub = 16 if jnp.dtype(compute_dtype).itemsize == 2 else 8
    Cin_p = _round_up(Cin, sub)
    C1_p = _round_up(Cout1, sub)

    # Large, lane-dense (128-multiple) time tiles; must cover the halo so the
    # previous tile's tail supplies it.
    Tt = min(_round_up(time_tile, 128), _round_up(L, 128))
    Tt = max(Tt, 128, _round_up(halo, 128))
    n_t = -(-L // Tt)
    L_pad = n_t * Tt

    # Right/channel zero-padding (causality => the padded tail never affects
    # outputs in [0, L); they are sliced off below).
    x_p = jnp.pad(x_ncl, ((0, 0), (0, Cin_p - Cin), (0, L_pad - L)))
    xc = x_p.astype(compute_dtype)

    def flatten_taps(w_oik_, cin_p):
        co, ci, kk = w_oik_.shape
        w = jnp.pad(w_oik_, ((0, 0), (0, cin_p - ci), (0, 0)))
        # (Cout, Cin_p, K) -> (Cout, K, Cin_p) -> (Cout, K*Cin_p): column
        # k*cin_p + c multiplies im2col row k*cin_p + c (tap k, channel c).
        return jnp.transpose(w, (0, 2, 1)).reshape(co, kk * cin_p)

    w1_flat = flatten_taps(w1_oik, Cin_p)
    w1_flat = jnp.pad(w1_flat, ((0, C1_p - Cout1), (0, 0))).astype(compute_dtype)
    b1_col = jnp.pad(b1, (0, C1_p - Cout1)).reshape(C1_p, 1).astype(jnp.float32)

    w2_flat = flatten_taps(w2_oik, C1_p).astype(compute_dtype)
    b2_col = b2.reshape(Cout2, 1).astype(jnp.float32)

    x_off = _round_up(halo, 128) if halo > 0 else 0   # aligned start of x_cur

    kernel = functools.partial(_fused_tcn_block_kernel,
                               dilation=dilation, K=K, pad=pad)

    itemsize = jnp.dtype(compute_dtype).itemsize
    flops = 2 * B * L_pad * K * (Cin_p * C1_p + C1_p * Cout2)
    bytes_accessed = (xc.size * itemsize
                      + B * Cout2 * L_pad * jnp.dtype(out_dtype).itemsize
                      + (w1_flat.size + w2_flat.size) * itemsize
                      + (b1_col.size + b2_col.size) * 4)
    cost = pl.CostEstimate(flops=flops, transcendentals=0,
                           bytes_accessed=bytes_accessed)

    out = pl.pallas_call(
        kernel,
        out_shape=jax.ShapeDtypeStruct((B, Cout2, L_pad), out_dtype),
        grid=(B, n_t),
        in_specs=[
            pl.BlockSpec((1, Cin_p, Tt), lambda b, t: (b, 0, t)),
            pl.BlockSpec((C1_p, K * Cin_p), lambda b, t: (0, 0)),
            pl.BlockSpec((C1_p, 1), lambda b, t: (0, 0)),
            pl.BlockSpec((Cout2, K * C1_p), lambda b, t: (0, 0)),
            pl.BlockSpec((Cout2, 1), lambda b, t: (0, 0)),
        ],
        out_specs=pl.BlockSpec((1, Cout2, Tt), lambda b, t: (b, 0, t)),
        scratch_shapes=[
            pltpu.VMEM((Cin_p, x_off + Tt), compute_dtype),   # x + carried halo
            pltpu.VMEM((C1_p, Tt + pad), compute_dtype),      # conv1 activations
        ],
        compiler_params=pltpu.CompilerParams(
            # Batch stays "parallel" (v7x megacore); time must be "arbitrary"
            # because the halo is carried in scratch across time tiles.
            dimension_semantics=("parallel", "arbitrary"),
            vmem_limit_bytes=32 * 1024 * 1024,
        ),
        cost_estimate=cost,
    )(xc, w1_flat, b1_col, w2_flat, b2_col)

    if L_pad != L:
        out = out[:, :, :L]
    return out


# --------------------------------------------------------------------------
# Parameter setup (deterministic, synthetic) -- weight_norm semantics:
#   w = g * v / ||v|| with ||v|| per output channel; g is initialized to ||v||
#   so effectively w == v at init (matching PyTorch's weight_norm init).
# --------------------------------------------------------------------------
def make_weightnorm_conv_params(key, n_in, n_out, kernel_size):
    kv, kb = jax.random.split(key)
    v = 0.01 * jax.random.normal(kv, (n_out, n_in, kernel_size), jnp.float32)
    norm = jnp.sqrt(jnp.sum(v * v, axis=(1, 2), keepdims=True))
    g = norm
    w = g * v / norm                                  # (Cout, Cin, K)
    bound = 1.0 / jnp.sqrt(n_in * kernel_size)
    b = jax.random.uniform(kb, (n_out,), jnp.float32, -bound, bound)
    return w, b


# --------------------------------------------------------------------------
# Pure-JAX reference (lax conv) for verification.
# --------------------------------------------------------------------------
def ref_block(x_ncl, w1_oik, b1, w2_oik, b2, dilation):
    def conv(x, w, b):
        pad = (w.shape[2] - 1) * dilation
        y = lax.conv_general_dilated(
            x, w, window_strides=(1,), padding=[(pad, 0)],
            rhs_dilation=(dilation,),
            dimension_numbers=("NCH", "OIH", "NCH"))
        return jax.nn.relu(y + b[None, :, None])
    return conv(conv(x_ncl, w1_oik, b1), w2_oik, b2)


if __name__ == "__main__":
    # (Batch, in_ch, seq_len) small but tiling-exercising shapes.
    B, n_inputs, n_outputs, L = 2, 4, 8, 512
    kernel_size, dilation = 3, 2

    key = jax.random.PRNGKey(0)
    kx, k1, k2 = jax.random.split(key, 3)

    x = jax.random.normal(kx, (B, n_inputs, L), jnp.float32)

    w1, b1 = make_weightnorm_conv_params(k1, n_inputs, n_outputs, kernel_size)
    w2, b2 = make_weightnorm_conv_params(k2, n_outputs, n_outputs, kernel_size)
    params = ((w1, b1), (w2, b2))

    expected = ref_block(x, w1, b1, w2, b2, dilation)

    # f32 operands, single large time tile: tight numerical check.
    out_f32 = jax.block_until_ready(
        temporal_block_forward(x, params, dilation, compute_dtype=jnp.float32))
    assert out_f32.shape == (B, n_outputs, L), out_f32.shape
    err = float(jnp.max(jnp.abs(out_f32 - expected)))
    assert err < 1e-5, f"f32 single-tile error {err}"

    # f32, forced multi-tile (Tt=128 -> 4 time tiles): exercises the carried
    # halo scratch and the first-tile zero masking.
    out_tiled = jax.block_until_ready(
        temporal_block_forward(x, params, dilation, time_tile=128,
                               compute_dtype=jnp.float32))
    err = float(jnp.max(jnp.abs(out_tiled - expected)))
    assert err < 1e-5, f"f32 multi-tile error {err}"

    # bf16 MXU-native operands with f32 accumulation: loose check.
    out_bf16 = jax.block_until_ready(
        temporal_block_forward(x, params, dilation, compute_dtype=jnp.bfloat16))
    assert out_bf16.shape == (B, n_outputs, L), out_bf16.shape
    err = float(jnp.max(jnp.abs(out_bf16 - expected)))
    assert err < 2e-2, f"bf16 error {err}"

    print("KERNEL_OK")
</pallas_src>

<mosaic_0001>
module attributes {stable_mosaic.version = 11 : i64} {
  func.func @_fused_tcn_block_kernel(%arg0: i32, %arg1: i32, %arg2: memref<1x8x512xf32, #tpu.memory_space<vmem>>, %arg3: memref<8x24xf32, #tpu.memory_space<vmem>>, %arg4: memref<8x1xf32, #tpu.memory_space<vmem>>, %arg5: memref<8x24xf32, #tpu.memory_space<vmem>>, %arg6: memref<8x1xf32, #tpu.memory_space<vmem>>, %arg7: memref<1x8x512xf32, #tpu.memory_space<vmem>>, %arg8: memref<8x640xf32, #tpu.memory_space<vmem>>, %arg9: memref<8x516xf32, #tpu.memory_space<vmem>>) attributes {dimension_semantics = [#tpu.dimension_semantics<parallel>, #tpu.dimension_semantics<arbitrary>], iteration_bounds = array<i64: 2, 1>, scalar_prefetch = 0 : i64, scratch_operands = 2 : i64, tpu.core_type = #tpu.core_type<tc>, window_params = [{transform_indices = @transform_0, window_bounds = array<i64: 1, 8, 512>}, {pipeline_mode = #tpu.pipeline_mode<synchronous>, transform_indices = @transform_1, window_bounds = array<i64: 8, 24>}, {pipeline_mode = #tpu.pipeline_mode<synchronous>, transform_indices = @transform_2, window_bounds = array<i64: 8, 1>}, {pipeline_mode = #tpu.pipeline_mode<synchronous>, transform_indices = @transform_3, window_bounds = array<i64: 8, 24>}, {pipeline_mode = #tpu.pipeline_mode<synchronous>, transform_indices = @transform_4, window_bounds = array<i64: 8, 1>}, {transform_indices = @transform_5, window_bounds = array<i64: 1, 8, 512>}]} {
    %c0 = arith.constant 0 : index
    %c0_0 = arith.constant 0 : index
    %c0_1 = arith.constant 0 : index
    %0 = vector.load %arg2[%c0, %c0_0, %c0_1] : memref<1x8x512xf32, #tpu.memory_space<vmem>>, vector<1x8x512xf32>
    %1 = vector.shape_cast %0 : vector<1x8x512xf32> to vector<8x512xf32>
    %c0_i32 = arith.constant 0 : i32
    %2 = arith.cmpi eq, %arg1, %c0_i32 : i32
    %3 = arith.extui %2 : i1 to i32
    %c0_i32_2 = arith.constant 0 : i32
    %4 = arith.cmpi ne, %3, %c0_i32_2 : i32
    scf.if %4 {
      %cst_31 = arith.constant 0.000000e+00 : f32
      %37 = vector.broadcast %cst_31 : f32 to vector<8x8xf32>
      %c0_32 = arith.constant 0 : index
      %c120_33 = arith.constant 120 : index
      %38 = vector.load %arg8[%c0_32, %c120_33] : memref<8x640xf32, #tpu.memory_space<vmem>>, vector<8x8xf32>
      tpu.vector_store %arg8[%c0_32, %c120_33], %37 {strides = array<i32>} : memref<8x640xf32, #tpu.memory_space<vmem>>, vector<8x8xf32>,
    } else {
    }
    %c0_3 = arith.constant 0 : index
    %c128 = arith.constant 128 : index
    %5 = vector.load %arg8[%c0_3, %c128] : memref<8x640xf32, #tpu.memory_space<vmem>>, vector<8x512xf32>
    tpu.vector_store %arg8[%c0_3, %c128], %1 {strides = array<i32>} : memref<8x640xf32, #tpu.memory_space<vmem>>, vector<8x512xf32>,
    %c0_4 = arith.constant 0 : index
    %c120 = arith.constant 120 : index
    %6 = vector.load %arg8[%c0_4, %c120] : memref<8x640xf32, #tpu.memory_space<vmem>>, vector<8x516xf32>
    %c0_5 = arith.constant 0 : index
    %c122 = arith.constant 122 : index
    %7 = vector.load %arg8[%c0_5, %c122] : memref<8x640xf32, #tpu.memory_space<vmem>>, vector<8x516xf32>
    %c0_6 = arith.constant 0 : index
    %c124 = arith.constant 124 : index
    %8 = vector.load %arg8[%c0_6, %c124] : memref<8x640xf32, #tpu.memory_space<vmem>>, vector<8x516xf32>
    %9 = tpu.concatenate %6, %7, %8 in 0 : vector<8x516xf32>, vector<8x516xf32>, vector<8x516xf32> -> vector<24x516xf32>
    %10 = vector.extract_strided_slice %1 {offsets = [0, 504], sizes = [8, 8], strides = [1, 1]} : vector<8x512xf32> to vector<8x8xf32>
    %c0_7 = arith.constant 0 : index
    %c120_8 = arith.constant 120 : index
    %11 = vector.load %arg8[%c0_7, %c120_8] : memref<8x640xf32, #tpu.memory_space<vmem>>, vector<8x8xf32>
    tpu.vector_store %arg8[%c0_7, %c120_8], %10 {strides = array<i32>} : memref<8x640xf32, #tpu.memory_space<vmem>>, vector<8x8xf32>,
    %c0_9 = arith.constant 0 : index
    %c0_10 = arith.constant 0 : index
    %12 = vector.load %arg3[%c0_9, %c0_10] : memref<8x24xf32, #tpu.memory_space<vmem>>, vector<8x24xf32>
    %cst = arith.constant dense<0.000000e+00> : vector<8x516xf32>
    %13 = tpu.matmul %12, %9, %cst {dimension_numbers = #tpu.dot_dimension_numbers<[1], [0], [0], [1], [0, 0, 1, 1], [], []>} : vector<8x24xf32>, vector<24x516xf32>, vector<8x516xf32> -> vector<8x516xf32>
    %c0_11 = arith.constant 0 : index
    %c0_12 = arith.constant 0 : index
    %14 = vector.load %arg4[%c0_11, %c0_12] : memref<8x1xf32, #tpu.memory_space<vmem>>, vector<8x1xf32>
    %15 = vector.broadcast %14 : vector<8x1xf32> to vector<8x516xf32>
    %16 = arith.addf %13, %15 : vector<8x516xf32>
    %cst_13 = arith.constant 0.000000e+00 : f32
    %17 = vector.broadcast %cst_13 : f32 to vector<8x516xf32>
    %18 = arith.maximumf %16, %17 : vector<8x516xf32>
    %c0_14 = arith.constant 0 : index
    %c0_15 = arith.constant 0 : index
    %19 = vector.load %arg9[%c0_14, %c0_15] : memref<8x516xf32, #tpu.memory_space<vmem>>, vector<8x516xf32>
    tpu.vector_store %arg9[%c0_14, %c0_15], %18 {strides = array<i32>} : memref<8x516xf32, #tpu.memory_space<vmem>>, vector<8x516xf32>,
    %c0_i32_16 = arith.constant 0 : i32
    %20 = arith.cmpi eq, %arg1, %c0_i32_16 : i32
    %21 = arith.extui %20 : i1 to i32
    %c0_i32_17 = arith.constant 0 : i32
    %22 = arith.cmpi ne, %21, %c0_i32_17 : i32
    scf.if %22 {
      %cst_31 = arith.constant 0.000000e+00 : f32
      %37 = vector.broadcast %cst_31 : f32 to vector<8x4xf32>
      %c0_32 = arith.constant 0 : index
      %c0_33 = arith.constant 0 : index
      %38 = vector.load %arg9[%c0_32, %c0_33] : memref<8x516xf32, #tpu.memory_space<vmem>>, vector<8x4xf32>
      tpu.vector_store %arg9[%c0_32, %c0_33], %37 {strides = array<i32>} : memref<8x516xf32, #tpu.memory_space<vmem>>, vector<8x4xf32>,
    } else {
    }
    %c0_18 = arith.constant 0 : index
    %c0_19 = arith.constant 0 : index
    %23 = vector.load %arg9[%c0_18, %c0_19] : memref<8x516xf32, #tpu.memory_space<vmem>>, vector<8x512xf32>
    %c0_20 = arith.constant 0 : index
    %c2 = arith.constant 2 : index
    %24 = vector.load %arg9[%c0_20, %c2] : memref<8x516xf32, #tpu.memory_space<vmem>>, vector<8x512xf32>
    %c0_21 = arith.constant 0 : index
    %c4 = arith.constant 4 : index
    %25 = vector.load %arg9[%c0_21, %c4] : memref<8x516xf32, #tpu.memory_space<vmem>>, vector<8x512xf32>
    %26 = tpu.concatenate %23, %24, %25 in 0 : vector<8x512xf32>, vector<8x512xf32>, vector<8x512xf32> -> vector<24x512xf32>
    %c0_22 = arith.constant 0 : index
    %c0_23 = arith.constant 0 : index
    %27 = vector.load %arg5[%c0_22, %c0_23] : memref<8x24xf32, #tpu.memory_space<vmem>>, vector<8x24xf32>
    %cst_24 = arith.constant dense<0.000000e+00> : vector<8x512xf32>
    %28 = tpu.matmul %27, %26, %cst_24 {dimension_numbers = #tpu.dot_dimension_numbers<[1], [0], [0], [1], [0, 0, 1, 1], [], []>} : vector<8x24xf32>, vector<24x512xf32>, vector<8x512xf32> -> vector<8x512xf32>
    %c0_25 = arith.constant 0 : index
    %c0_26 = arith.constant 0 : index
    %29 = vector.load %arg6[%c0_25, %c0_26] : memref<8x1xf32, #tpu.memory_space<vmem>>, vector<8x1xf32>
    %30 = vector.broadcast %29 : vector<8x1xf32> to vector<8x512xf32>
    %31 = arith.addf %28, %30 : vector<8x512xf32>
    %cst_27 = arith.constant 0.000000e+00 : f32
    %32 = vector.broadcast %cst_27 : f32 to vector<8x512xf32>
    %33 = arith.maximumf %31, %32 : vector<8x512xf32>
    %c0_28 = arith.constant 0 : index
    %c0_29 = arith.constant 0 : index
    %c0_30 = arith.constant 0 : index
    %34 = vector.load %arg7[%c0_28, %c0_29, %c0_30] : memref<1x8x512xf32, #tpu.memory_space<vmem>>, vector<1x8x512xf32>
    %35 = vector.shape_cast %34 : vector<1x8x512xf32> to vector<8x512xf32>
    %36 = vector.shape_cast %33 : vector<8x512xf32> to vector<1x8x512xf32>
    tpu.vector_store %arg7[%c0_28, %c0_29, %c0_30], %36 {strides = array<i32>} : memref<1x8x512xf32, #tpu.memory_space<vmem>>, vector<1x8x512xf32>,
    return
  }
  func.func @transform_0(%arg0: i32, %arg1: i32) -> (i32, i32, i32) {
    %c0_i32 = arith.constant 0 : i32
    %c0_i32_0 = arith.constant 0 : i32
    return %arg0, %c0_i32, %arg1 : i32, i32, i32
  }
  func.func @transform_1(%arg0: i32, %arg1: i32) -> (i32, i32) {
    %c0_i32 = arith.constant 0 : i32
    %c0_i32_0 = arith.constant 0 : i32
    %c0_i32_1 = arith.constant 0 : i32
    return %c0_i32, %c0_i32_0 : i32, i32
  }
  func.func @transform_2(%arg0: i32, %arg1: i32) -> (i32, i32) {
    %c0_i32 = arith.constant 0 : i32
    %c0_i32_0 = arith.constant 0 : i32
    %c0_i32_1 = arith.constant 0 : i32
    return %c0_i32, %c0_i32_0 : i32, i32
  }
  func.func @transform_3(%arg0: i32, %arg1: i32) -> (i32, i32) {
    %c0_i32 = arith.constant 0 : i32
    %c0_i32_0 = arith.constant 0 : i32
    %c0_i32_1 = arith.constant 0 : i32
    return %c0_i32, %c0_i32_0 : i32, i32
  }
  func.func @transform_4(%arg0: i32, %arg1: i32) -> (i32, i32) {
    %c0_i32 = arith.constant 0 : i32
    %c0_i32_0 = arith.constant 0 : i32
    %c0_i32_1 = arith.constant 0 : i32
    return %c0_i32, %c0_i32_0 : i32, i32
  }
  func.func @transform_5(%arg0: i32, %arg1: i32) -> (i32, i32, i32) {
    %c0_i32 = arith.constant 0 : i32
    %c0_i32_0 = arith.constant 0 : i32
    return %arg0, %c0_i32, %arg1 : i32, i32, i32
  }
}

</mosaic_0001>

<bundles_post_ra>
// kernel: tpu_custom_call.1
= control target key start
LH: loop header
LB: loop body
LE: loop exit
PB: predicated region body
PF: predicated region fallthrough
CT: control target
= control target key end

     0   :  { %10 = vsyncpa [#allocation5], 0  ;;  %s1407_s0 = inlined_call_operand.hbm [shape: f32[2,8,512], index: 0, kind: input, shape index: {}]   ;;  %s1408_s1 = inlined_call_operand.vmem [shape: f32[8,24], index: 1, kind: input, shape index: {}]   ;;  %s1409_s2 = inlined_call_operand.vmem [shape: f32[8,1], index: 2, kind: input, shape index: {}]   ;;  %s1410_s3 = inlined_call_operand.vmem [shape: f32[8,24], index: 3, kind: input, shape index: {}]   ;;  %s1411_s4 = inlined_call_operand.vmem [shape: f32[8,1], index: 4, kind: input, shape index: {}]   ;;  %s1412_s5 = inlined_call_operand.hbm [shape: f32[2,8,512], index: 5, kind: output, shape index: {}]  }
   0x1   :  { %12 = vsyncpa [#allocation5 + $0x1], 0 }
   0x2   :  { %13 = vsyncpa [#allocation6], 0 }
   0x3   :  { %15 = vsyncpa [#allocation6 + $0x1], 0  ;;  %s1173_s18 = smov 0   ;;  %s1175_s19 = smov 0  }
   0x4   :  { %s1177_s20 = smov 0   ;;  %s1179_s21 = smov 0  }
   0x5   :  { %s1181_s22 = smov 0   ;;  %s1183_s23 = smov 0  }
   0x6 LB: > { %s920_s24 = sadd.s32 4294967295, %s1133_s23   ;;  %s921_s25 = sadd.s32 4294967294, %s1133_s23   ;;  %s1133_s23 = sphi %s1183_s23, %s21_s23   ;;  %s1129_s22 = sphi %s1181_s22, %s1424_s22   ;;  %s1125_s21 = sphi %s1179_s21, %s1423_s21   ;;  %s1121_s20 = sphi %s1177_s20, %s1422_s20   ;;  %s1117_s19 = sphi %s1175_s19, %s1421_s19   ;;  %s1113_s18 = sphi %s1173_s18, %s1420_s18  }
   0x7   : > { %s33_s26 = sadd.s32 1, %s1129_s22  ;;  %s42_s27 = sadd.s32 1, %s1121_s20 }
   0x8   : > { %p35_p0 = scmp.ge.s32.totalorder %s33_s26, 2  ;;  %p49_p1 = scmp.ne.s32.totalorder %s1121_s20, %s1117_s19 }
   0x9   : > { %p50_p2 = scmp.eq.s32.totalorder %s1133_s23, 0  ;;  %p55_p3 = scmp.ne.s32.totalorder %s1117_s19, %s1113_s18 }
   0xa   : > { %s1426_s26 = smov (%p35_p0, %s33_s26), 0  ;;  %p56_p5 = scmp.eq.s32.totalorder %s920_s24, 0 }
   0xb   : > { %p1214_p4 = por %p50_p2, %p49_p1  ;;  %s37_s29 = ssub.s32 %s1129_s22, %s1426_s26 }
   0xc   : > { %p165_p6 = scmp.eq.s32.totalorder %s920_s24, 1  ;;  %p40_p7 = scmp.eq.s32.totalorder %s37_s29, 0 }
   0xd   : > { %p1220_p8 = por %p56_p5, %p55_p3  ;;  %p171_p10 = scmp.eq.s32.totalorder %s921_s25, 1 }
   0xe   : > { %p1224_p9 = por %p165_p6, %p49_p1  ;;  %p967_p13 = scmp.lt.s32.totalorder %s1133_s23, 2 }
   0xf   : > { %s1229_s7 = scalar_select %p40_p7, %s1121_s20, %s42_s27  }
  0x10   : > { %p1231_p11 = por %p171_p10, %p55_p3  ;;  %s203_s9 = sand.u32 1, %s1121_s20  }
  0x11   : > { %s924_s10 = sshll.u32 %s203_s9, 5  ;;  %s940_s11 = sshll.u32 %s1129_s22, 9 }
  0x12   : > { %s1416_s8 = scalar_select %p1231_p11, 1, 0 }
  0x13   : > { %s215_s14 = scalar_lea.hbm %s1407_s0, %s940_s11  ;;  %s207_s15 = scalar_lea.vmem [#allocation4], %s924_s10 }
  0x14   : > { %s217_s16 = sshll.u32 %s207_s15, 4  ;;  %p1244_p0 = pnand %p967_p13, %p1214_p4  ;;  %s218_s16 = int_to_ptr.vmem [resolvable:$true] %s217_s16 }
  0x15   : > { %p927_p1 = scmp.ge.s32.totalorder %s1133_s23, 1  ;;  %p222_p2 = scmp.lt.s32.totalorder %s1133_s23, 3 }
  0x16   : > { %s204_s24 = scalar_lea.sflag [#allocation5], %s203_s9  ;;  %p1027_p3 = pneg %p1244_p0 }
  0x17   : > { %s1038_s25 = scalar_lea.vmem %s218_s16, 512  ;;  %s1135_s27 = smov [#allocation4]  }
  0x18   : > { %p1039_p5 = scmp.ne.s32.totalorder %s218_s16, %s1038_s25  ;;  %s1043_s29 = sshll.u32 %s1135_s27, 4  ;;  %s1044_s29 = int_to_ptr.vmem [resolvable:$false] %s1043_s29 }
  0x19   : > { %s1045_s10 = scalar_lea.vmem %s1044_s29, 1024  ;;  %p1046_p10 = scmp.lt.s32.totalorder %s218_s16, %s1044_s29 }
  0x1a   : > { %p1041_p6 = pnand %p1039_p5, %p1027_p3  ;;  %p1047_p12 = scmp.lt.s32.totalorder %s1045_s10, %s1038_s25 }
  0x1c   : > { %p1042_p7 = pneg %p1041_p6  ;;  %p1048_p4 = por %p1047_p12, %p1046_p10 }
  0x1e   : > { %p1049_p13 = pnand %p1048_p4, %p1042_p7 }
  0x20   : > { %1052 = shalt.err (!%p1049_p13)
}
  0x21   : > { %962 = dma.hbm_to_vmem [thread:$0]  (!%p1244_p0), %s215_s14, 512, %s218_s16, %s204_s24  }
  0x22   : > { %p223_p11 = pnand %p927_p1, %p222_p2 }
  0x23   : > { %s1259_s28 = sand.u32 (!%p223_p11), 1, %s1117_s19  }
  0x24   : > { %226 = sbr.rel (%p223_p11) target bundleno = 866 (0x362), region = 40  ;;  %s928_s9 = sshll.u32 (!%p223_p11), %s1259_s28, 5 }
  0x25   : > { %s229_s11 = scalar_lea.sflag (!%p223_p11), [#allocation5], %s1259_s28  ;;  %s232_s12 = scalar_lea.vmem (!%p223_p11), [#allocation4], %s928_s9 }
  0x29   : > { %1104 = dma.done.wait (%p1220_p8), %s229_s11, 512  }
  0x2a   : > { %1106 = vsyncadd (%p1220_p8), %s229_s11, 4294966784  ;;  %vm269_vm0 = vcmask 1048512   ;;  %v1136_v0 = vmov 0.0   ;;  %v264_v1 = vld [vmem:[%s232_s12 + $0x18] sm:$0xff]  ;;  %v261_v2 = vld [vmem:[%s232_s12] sm:$0xff]  ;;  %s1137_s13 = smov 124  }
  0x2b   : > { %270 = vst.msk [vmem:[#allocation2] sm:$0xff] %vm269_vm0, %v1136_v0  ;;  %450 = vmatprep.mubr.f32.mxu0 %v1136_v0  ;;  %521 = vmatprep.mubr.f32.mxu1 %v1136_v0  ;;  %v263_v3 = vld [vmem:[%s232_s12 + $0x10] sm:$0xff]  ;;  %v262_v5 = vld [vmem:[%s232_s12 + $0x8] sm:$0xff]  ;;  %s1138_s30 = smov 126   ;;  %s1139_s14 = smov 8   ;;  %vm310_vm1 = vcmask 1014784  }
  0x2c   : > { %302 = vrot.lane.b32.xlu0 %v261_v2, %s1137_s13  ;;  %vm295_vm2 = vcmask 1031168   ;;  %v1140_v22 = vmov 0   ;;  %v318_v25 = vld [vmem:[%s1409_s2] sm:$0xff]  ;;  %vm354_vm3 = vcmask 64512   ;;  %vm382_vm4 = vcmask 195584   ;;  %s941_s11 = sshll.u32 %s1125_s21, 9 }
  0x2d   : > { %1023 = vset.pattern.permute.xlu1 %v1140_v22  ;;  %1024 = vset.pattern.permute.xlu0 %v1140_v22  ;;  %v317_v45 = vld [vmem:[%s1408_s1] sm:$0xff]  ;;  %vm1141_vm5 = vmmov 0   ;;  %vm607_vm6 = vcmask 31744   ;;  %s258_s12 = scalar_lea.vmem [#allocation7], %s928_s9  ;;  %s1365_s15 = scalar_lea.hbm %s1412_s5, %s941_s11 }
  0x2e   : > { %s820_s16 = scalar_lea.sflag [#allocation6], %s1259_s28  ;;  %s1142_s9 = smov [#allocation7]  }
  0x2f   : > { %s1057_s17 = sshll.u32 %s1142_s9, 4  ;;  %s1058_s17 = int_to_ptr.vmem [resolvable:$false] %s1057_s17 }
  0x30   : > { %304 = vrot.lane.b32.xlu0 %v262_v5, %s1137_s13  ;;  %s1059_s24 = scalar_lea.vmem %s1058_s17, 1024 }
  0x32   : > { %v275_v4 = vld [vmem:[#allocation2] sm:$0xff] }
  0x33   : > { %300 = vrot.lane.b32.xlu1 %v275_v4, %s1137_s13  ;;  %316 = vst.msk [vmem:[#allocation2] sm:$0xff] %vm269_vm0, %v264_v1 }
  0x34   : > { %287 = vrot.lane.b32.xlu0 %v261_v2, %s1138_s30 }
  0x37   : > { %285 = vrot.lane.b32.xlu1 %v275_v4, %s1138_s30 }
  0x38   : > { %291 = vrot.lane.b32.xlu0 %v263_v3, %s1138_s30 }
  0x3b   : > { %306 = vrot.lane.b32.xlu1 %v263_v3, %s1137_s13 }
  0x3c   : > { %308 = vrot.lane.b32.xlu0 %v264_v1, %s1137_s13 }
  0x3f   : > { %289 = vrot.lane.b32.xlu1 %v262_v5, %s1138_s30 }
  0x40   : > { %326 = vrot.lane.b32.xlu0 %v261_v2, %s1139_s14 }
  0x43   : > { %293 = vrot.lane.b32.xlu1 %v264_v1, %s1138_s30 }
  0x44   : > { %324 = vrot.lane.b32.xlu0 %v275_v4, %s1139_s14 }
  0x47   : > { %328 = vrot.lane.b32.xlu1 %v262_v5, %s1139_s14 }
  0x9e   : > { %v303_v6 = vpop.permute.xlu0 %302 }
  0xa2   : > { %v305_v8 = vpop.permute.xlu0 %304 }
  0xa3   : > { %v312_v17 = vsel %vm310_vm1, %v303_v6, %v305_v8 }
  0xa5   : > { %v301_v7 = vpop.permute.xlu1 %300 }
  0xa6   : > { %v288_v10 = vpop.permute.xlu0 %287  ;;  %v311_v19 = vsel %vm310_vm1, %v301_v7, %v303_v6 }
  0xa9   : > { %v286_v9 = vpop.permute.xlu1 %285 }
  0xaa   : > { %v292_v12 = vpop.permute.xlu0 %291  ;;  %v296_v20 = vsel %vm295_vm2, %v286_v9, %v288_v10  ;;  %v660_v9 = vld [vmem:[%s1411_s4] sm:$0xff] }
  0xad   : > { %v307_v11 = vpop.permute.xlu1 %306 }
  0xae   : > { %v309_v14 = vpop.permute.xlu0 %308  ;;  %v313_v16 = vsel %vm310_vm1, %v305_v8, %v307_v11 }
  0xaf   : > { %352 = vrot.lane.b32.xlu1 %v309_v14, %s1139_s14  ;;  %v314_v24 = vsel %vm310_vm1, %v307_v11, %v309_v14 }
  0xb1   : > { %v290_v13 = vpop.permute.xlu1 %289 }
  0xb2   : > { %v297_v18 = vsel %vm295_vm2, %v288_v10, %v290_v13  ;;  %v298_v21 = vsel %vm295_vm2, %v290_v13, %v292_v12  ;;  %v327_v26 = vpop.permute.xlu0 %326 }
  0xb3   : > { %348 = vrot.lane.b32.xlu1 %v313_v16, %s1139_s14 }
  0xb5   : > { %v294_v15 = vpop.permute.xlu1 %293 }
  0xb6   : > { %342 = vrot.lane.b32.xlu0 %v294_v15, %s1139_s14  ;;  %v299_v23 = vsel %vm295_vm2, %v292_v12, %v294_v15  ;;  %v325_v28 = vpop.permute.xlu0 %324 }
  0xb7   : > { %336 = vrot.lane.b32.xlu1 %v297_v18, %s1139_s14  ;;  %v355_v44 = vsel %vm354_vm3, %v325_v28, %v327_v26  ;;  %v659_v28 = vld [vmem:[%s1410_s3] sm:$0xff] }
  0xb9   : > { %v329_v27 = vpop.permute.xlu1 %328 }
  0xba   : > { %346 = vrot.lane.b32.xlu0 %v312_v17, %s1139_s14  ;;  %v356_v41 = vsel %vm354_vm3, %v327_v26, %v329_v27 }
  0xbb   : > { %334 = vrot.lane.b32.xlu1 %v296_v20, %s1139_s14 }
  0xbe   : > { %344 = vrot.lane.b32.xlu0 %v311_v19, %s1139_s14 }
  0xbf   : > { %340 = vrot.lane.b32.xlu1 %v299_v23, %s1139_s14 }
  0xc2   : > { %338 = vrot.lane.b32.xlu0 %v298_v21, %s1139_s14 }
  0xc3   : > { %330 = vrot.lane.b32.xlu1 %v263_v3, %s1139_s14 }
  0xc6   : > { %350 = vrot.lane.b32.xlu0 %v314_v24, %s1139_s14 }
  0xc7   : > { %321 = vperm.xlu1 %1023, %v318_v25  }
  0xca   : > { %332 = vrot.lane.b32.xlu0 %v264_v1, %s1139_s14 }
 0x121   : > { %v353_v29 = vpop.permute.xlu1 %352 }
 0x125   : > { %v349_v31 = vpop.permute.xlu1 %348 }
 0x128   : > { %v343_v30 = vpop.permute.xlu0 %342 }
 0x129   : > { %v337_v34 = vpop.permute.xlu1 %336 }
 0x12c   : > { %v347_v32 = vpop.permute.xlu0 %346 }
 0x12d   : > { %v364_v33 = vsel %vm354_vm3, %v347_v32, %v349_v31  ;;  %v335_v37 = vpop.permute.xlu1 %334 }
 0x12e   : > { %412 = vmatprep.subr.mxu0 %v364_v33  ;;  %v359_v40 = vsel %vm354_vm3, %v335_v37, %v337_v34 }
 0x130   : > { %v345_v35 = vpop.permute.xlu0 %344 }
 0x131   : > { %v363_v36 = vsel %vm354_vm3, %v345_v35, %v347_v32  ;;  %v341_v42 = vpop.permute.xlu1 %340 }
 0x132   : > { %413 = vmatpush1.msra.mxu0 %v363_v36  ;;  %v362_v48 = vsel %vm354_vm3, %v341_v42, %v343_v30 }
 0x134   : > { %v339_v38 = vpop.permute.xlu0 %338 }
 0x135   : > { %v360_v39 = vsel %vm354_vm3, %v337_v34, %v339_v38  ;;  %v331_v49 = vpop.permute.xlu1 %330  ;;  %v361_v50 = vsel %vm354_vm3, %v339_v38, %v341_v42 }
 0x136   : > { %414 = vmatprep.subr.mxu0 %v360_v39  ;;  %v357_v53 = vsel %vm354_vm3, %v329_v27, %v331_v49 }
 0x137   : > { %415 = vmatpush1.msra.mxu0 %v359_v40 }
 0x138   : > { %v351_v43 = vpop.permute.xlu0 %350  ;;  %416 = vmatprep.subr.mxu0 %v356_v41 }
 0x139   : > { %v366_v46 = vsel %vm354_vm3, %v351_v43, %v353_v29  ;;  %v365_v47 = vsel %vm354_vm3, %v349_v31, %v351_v43  ;;  %417 = vmatpush1.msra.mxu0 %v355_v44 }
 0x13a   : > { %483 = vmatprep.subr.mxu1 %v366_v46  ;;  %946 = vmatprep.subr.mxu0 %v1136_v0 }
 0x13b   : > { %484 = vmatpush1.msra.mxu1 %v365_v47  ;;  %930 = vmatmul.mubr.msk.f32.vlgmr.msra.gmra.mxu0 %vm382_vm4, %v317_v45 }
 0x13c   : > { %485 = vmatprep.subr.mxu1 %v362_v48  ;;  %947 = vmatpush3.msra.mxu0 %v353_v29  ;;  %v333_v51 = vpop.permute.xlu0 %332 }
 0x13d   : > { %486 = vmatpush1.msra.mxu1 %v361_v50  ;;  %948 = vmatprep.subr.mxu0 %v1136_v0  ;;  %v358_v52 = vsel %vm354_vm3, %v331_v49, %v333_v51 }
 0x13e   : > { %949 = vmatpush3.msra.mxu0 %v343_v30  ;;  %487 = vmatprep.subr.mxu1 %v358_v52 }
 0x13f   : > { %950 = vmatprep.subr.mxu0 %v1136_v0  ;;  %488 = vmatpush1.msra.mxu1 %v357_v53 }
 0x140   : > { %951 = vmatpush3.msra.mxu0 %v333_v51  ;;  %952 = vmatprep.mubr.msk.f32.mxu0 %vm1141_vm5, %v1136_v0 }
 0x141   : > { %931 = vmatmul.mubr.msk.f32.vlgmr.msra.gmra.mxu1 %vm382_vm4, %v317_v45  ;;  %953 = vmatmul.mubr.msk.f32.vlgmr.msra.gmra.mxu0 %vm382_vm4, %v317_v45 }
 0x142   : > { %733 = vmatprep.mubr.f32.mxu1 %v1136_v0  ;;  %804 = vmatprep.mubr.f32.mxu0 %v1136_v0  ;;  %v322_v54 = vpop.permute.xlu1 %321 }
 0x1fb   : > { %v452_v55 = vpop.f32.mrf.mxu0 }
 0x1fc   : > { %v453_v56 = vadd.f32 %v452_v55, %v322_v54 }
 0x1fd   : > { %v454_v57 = vpop.f32.mrf.mxu0 }
 0x1fe   : > { %v455_v58 = vadd.f32 %v454_v57, %v322_v54  ;;  %v598_v59 = vmax.f32 %v453_v56, 0.0 }
 0x200   : > { %v599_v60 = vmax.f32 %v455_v58, 0.0  ;;  %603 = vst [vmem:[#allocation3] sm:$0xff] %v598_v59 }
 0x201   : > { %v523_v61 = vpop.f32.mrf.mxu1  ;;  %v594_v62 = vpop.f32.mrf.mxu0  ;;  %612 = vst.msk [vmem:[#allocation3] sm:$0xff] %vm607_vm6, %v1136_v0 }
 0x202   : > { %v524_v63 = vadd.f32 %v523_v61, %v322_v54  ;;  %v595_v1 = vadd.f32 %v594_v62, %v322_v54 }
 0x203   : > { %v525_v2 = vpop.f32.mrf.mxu1  ;;  %v954_v3 = vpop.f32.mrf.mxu0 }
 0x204   : > { %v600_v4 = vmax.f32 %v524_v63, 0.0  ;;  %v602_v5 = vmax.f32 %v595_v1, 0.0  ;;  %v526_v6 = vadd.f32 %v525_v2, %v322_v54 }
 0x206   : > { %608 = vst.msk [vmem:[#allocation3 + $0x20] sm:$0xff] %vm607_vm6, %v602_v5  ;;  %v601_v7 = vmax.f32 %v526_v6, 0.0  ;;  %627 = vrot.lane.b32.xlu0 %v600_v4, %s1138_s30  ;;  %645 = vrot.lane.b32.xlu1 %v600_v4, %s1137_s13 }
 0x208   : > { %v613_v8 = vld [vmem:[#allocation3] sm:$0xff] }
 0x20a   : > { %641 = vrot.lane.b32.xlu0 %v613_v8, %s1137_s13  ;;  %625 = vrot.lane.b32.xlu1 %v599_v60, %s1138_s30 }
 0x20d   : > { %v617_v0 = vld [vmem:[#allocation3 + $0x20] sm:$0xff] }
 0x20e   : > { %643 = vrot.lane.b32.xlu0 %v599_v60, %s1137_s13  ;;  %629 = vrot.lane.b32.xlu1 %v601_v7, %s1138_s30 }
 0x212   : > { %647 = vrot.lane.b32.xlu0 %v601_v7, %s1137_s13  ;;  %649 = vrot.lane.b32.xlu1 %v617_v0, %s1137_s13  ;;  %s836_s13 = sshll.u32 %s258_s12, 4  ;;  %s837_s13 = int_to_ptr.vmem [resolvable:$true] %s836_s13 }
 0x213   : > { %s1053_s21 = scalar_lea.vmem %s837_s13, 512  ;;  %p1060_p0 = scmp.lt.s32.totalorder %s837_s13, %s1058_s17 }
 0x214   : > { %p1054_p8 = scmp.ne.s32.totalorder %s837_s13, %s1053_s21  ;;  %p1061_p1 = scmp.lt.s32.totalorder %s1059_s24, %s1053_s21 }
 0x216   : > { %631 = vrot.lane.b32.xlu0 %v617_v0, %s1138_s30  ;;  %623 = vrot.lane.b32.xlu1 %v613_v8, %s1138_s30  ;;  %p1055_p11 = pnand %p1054_p8, %p1224_p9  ;;  %p1062_p2 = por %p1061_p1, %p1060_p0 }
 0x218   : > { %p1056_p12 = pneg %p1055_p11 }
 0x21a   : > { %663 = vperm.xlu0 %1024, %v660_v9   ;;  %p1063_p3 = pnand %p1062_p2, %p1056_p12 }
 0x278   : > { %v628_v10 = vpop.permute.xlu0 %627  ;;  %v646_v11 = vpop.permute.xlu1 %645 }
 0x27c   : > { %v642_v12 = vpop.permute.xlu0 %641  ;;  %v626_v13 = vpop.permute.xlu1 %625 }
 0x27d   : > { %v634_v18 = vsel %vm295_vm2, %v626_v13, %v628_v10 }
 0x280   : > { %v644_v14 = vpop.permute.xlu0 %643  ;;  %v630_v15 = vpop.permute.xlu1 %629 }
 0x281   : > { %v651_v16 = vsel %vm310_vm1, %v642_v12, %v644_v14  ;;  %v652_v17 = vsel %vm310_vm1, %v644_v14, %v646_v11  ;;  %v635_v27 = vsel %vm295_vm2, %v628_v10, %v630_v15 }
 0x282   : > { %695 = vmatprep.subr.mxu1 %v652_v17 }
 0x283   : > { %696 = vmatpush1.msra.mxu1 %v651_v16 }
 0x284   : > { %v648_v19 = vpop.permute.xlu0 %647  ;;  %697 = vmatprep.subr.mxu1 %v634_v18  ;;  %v650_v20 = vpop.permute.xlu1 %649 }
 0x285   : > { %v653_v21 = vsel %vm310_vm1, %v646_v11, %v648_v19  ;;  %v654_v22 = vsel %vm310_vm1, %v648_v19, %v650_v20 }
 0x286   : > { %766 = vmatprep.subr.mxu0 %v654_v22 }
 0x287   : > { %767 = vmatpush1.msra.mxu0 %v653_v21 }
 0x288   : > { %v632_v23 = vpop.permute.xlu0 %631  ;;  %v624_v24 = vpop.permute.xlu1 %623 }
 0x289   : > { %v633_v25 = vsel %vm295_vm2, %v624_v24, %v626_v13  ;;  %v636_v26 = vsel %vm295_vm2, %v630_v15, %v632_v23 }
 0x28a   : > { %698 = vmatpush1.msra.mxu1 %v633_v25  ;;  %768 = vmatprep.subr.mxu0 %v636_v26 }
 0x28b   : > { %699 = vmatprep.subr.mxu1 %v599_v60  ;;  %769 = vmatpush1.msra.mxu0 %v635_v27 }
 0x28c   : > { %700 = vmatpush1.msra.mxu1 %v613_v8  ;;  %770 = vmatprep.subr.mxu0 %v601_v7 }
 0x28d   : > { %933 = vmatmul.mubr.msk.f32.vlgmr.msra.gmra.mxu1 %vm382_vm4, %v659_v28  ;;  %771 = vmatpush1.msra.mxu0 %v600_v4 }
 0x28e   : > { %934 = vmatmul.mubr.msk.f32.vlgmr.msra.gmra.mxu0 %vm382_vm4, %v659_v28 }
 0x295   : > { %v664_v29 = vpop.permute.xlu0 %663 }
 0x34d   : > { %v735_v30 = vpop.f32.mrf.mxu1 }
 0x34e   : > { %v736_v31 = vadd.f32 %v735_v30, %v664_v29  ;;  %v806_v32 = vpop.f32.mrf.mxu0 }
 0x34f   : > { %v807_v33 = vadd.f32 %v806_v32, %v664_v29  ;;  %v737_v34 = vpop.f32.mrf.mxu1 }
 0x350   : > { %v811_v35 = vmax.f32 %v736_v31, 0.0  ;;  %v738_v36 = vadd.f32 %v737_v34, %v664_v29  ;;  %v808_v37 = vpop.f32.mrf.mxu0 }
 0x351   : > { %v813_v38 = vmax.f32 %v807_v33, 0.0  ;;  %v809_v39 = vadd.f32 %v808_v37, %v664_v29 }
 0x352   : > { %815 = vst [vmem:[%s258_s12] sm:$0xff] %v811_v35  ;;  %v812_v40 = vmax.f32 %v738_v36, 0.0 }
 0x353   : > { %817 = vst [vmem:[%s258_s12 + $0x10] sm:$0xff] %v813_v38  ;;  %v814_v41 = vmax.f32 %v809_v39, 0.0 }
 0x354   : > { %816 = vst [vmem:[%s258_s12 + $0x8] sm:$0xff] %v812_v40 }
 0x355   : > { %818 = vst [vmem:[%s258_s12 + $0x18] sm:$0xff] %v814_v41 }
 0x356   : > { %1066 = shalt.err (!%p1063_p3)
}
 0x357   : > { %s1067_s25 = scalar_lea.hbm %s1365_s15, 512  ;;  %s1071_s29 = scalar_lea.hbm %s1412_s5, 1024 }
 0x358   : > { %p1068_p5 = scmp.ne.s32.totalorder %s1365_s15, %s1067_s25  ;;  %p1072_p10 = scmp.lt.s32.totalorder %s1365_s15, %s1412_s5 }
 0x359   : > { %p1073_p4 = scmp.lt.s32.totalorder %s1071_s29, %s1067_s25 }
 0x35a   : > { %p1069_p6 = pnand %p1068_p5, %p1224_p9 }
 0x35b   : > { %p1074_p13 = por %p1073_p4, %p1072_p10 }
 0x35c   : > { %p1070_p7 = pneg %p1069_p6 }
 0x35e   : > { %p1075_p8 = pnand %p1074_p13, %p1070_p7 }
 0x360   : > { %1078 = shalt.err (!%p1075_p8)
}
 0x361   : > { %957 = dma.vmem_to_hbm [thread:$0]  (%p1224_p9), %s837_s13, 512, %s1365_s15, %s820_s16  }
 0x362 PF: > { %s848_s12 = sand.u32 1, %s1113_s18   ;;  %p1418_p11 = scmp.ne.s32.totalorder %s1416_s8, 0 }
 0x363   : > { %p1419_p12 = scmp.ge.s32.totalorder %s1133_s23, 2  ;;  %s849_s30 = scalar_lea.sflag [#allocation6], %s848_s12 }
 0x365   : > { %p964_p0 = pnand %p1419_p12, %p1418_p11 }
 0x367   : > { %p965_p1 = pneg %p964_p0 }
 0x369   : > { %1108 = dma.done.wait (%p965_p1), %s849_s30, 512  }
 0x36a   : > { %1110 = vsyncadd (%p965_p1), %s849_s30, 4294966784  ;;  %s21_s23 = sadd.s32 1, %s1133_s23   ;;  %s1420_s18 = smov %s1117_s19 }
 0x36b   : > { %p18_p2 = scmp.ge.s32.totalorder %s21_s23, 4   ;;  %s1421_s19 = smov %s1121_s20 }
 0x36c   : > { %s1422_s20 = smov %s1229_s7  ;;  %s1423_s21 = smov %s1129_s22 }
 0x36d   : > { %s1424_s22 = smov %s1426_s26  ;;  %20 = sbr.rel (!%p18_p2) target bundleno = 6 (0x6), region = 93 }
 0x372   :  { %854 = vsyncpa [#allocation5], 1 }
 0x373   :  { %856 = vsyncpa [#allocation5 + $0x1], 1 }
 0x374   :  { %857 = vsyncpa [#allocation6], 1 }
 0x375   :  { %859 = vsyncpa [#allocation6 + $0x1], 1 }

</bundles_post_ra>
